<compile_context>
chip_gen: v7x
topology: tpu7x:2x2x1
jax: 0.10.0
libtpu: 0.0.40
codegen_flags: <defaults>
</compile_context>

<pallas_src>
import functools
import math

import jax
import jax.numpy as jnp
from jax.experimental import pallas as pl
from jax.experimental.pallas import tpu as pltpu

LANE = 128
SUBLANE = 8


def _round_up(x, m):
    return (x + m - 1) // m * m


# --------------------------------------------------------------------------
# Kernel
# --------------------------------------------------------------------------
def residual_mlp_kernel(x_ref, wcat_ref, m_ref, bias_ref, out_ref, xpad_ref,
                        *, n_blocks, r_off, out_w, compute_dtype):
    """Whole ResidualMLP forward on one (batch_tile, ...) tile.

    x_ref   : (tb, in_dim)          raw (narrow) input activations
    wcat_ref: (n_blocks, P, W)      W1 in lanes [0:dout], Wr in lanes [r_off:r_off+dout]
    m_ref   : (n_blocks, W, P)      W2 in rows [0:dout], identity in rows [r_off:r_off+dout]
    bias_ref: (n_blocks, 1, W)      b1 in lanes [0:dout], (br + b2) in lanes [r_off:...]
    out_ref : (tb, out_w)           out_w is P (lane-dense) or out_dim (narrow)
    xpad_ref: (tb, P) VMEM scratch  lane-widened activations
    """
    tb, p = xpad_ref.shape
    w = wcat_ref.shape[2]
    in_dim = x_ref.shape[1]

    # Widen the narrow input to a lane-dense (tb, P) activation once per tile.
    xpad_ref[...] = jnp.zeros_like(xpad_ref)
    xpad_ref[:, :in_dim] = x_ref[...].astype(compute_dtype)
    h = xpad_ref[...]

    # Hoisted once (JAX does not CSE broadcast_in_dim): lanes < r_off carry the
    # ReLU branch, lanes >= r_off carry the residual branch (pass-through).
    relu_lane = jax.lax.broadcasted_iota(jnp.int32, (tb, w), 1) < r_off

    for i in range(n_blocks):                                   # static unroll
        # Fused matmul for both branches: [W1 h + b1 | Wr h + br + b2]
        hw = jnp.dot(h, wcat_ref[i],
                     preferred_element_type=jnp.float32) + bias_ref[i]
        u = jnp.where(relu_lane, jnp.maximum(hw, 0.0), hw).astype(compute_dtype)
        # Second matmul produces net + residual directly (identity rows carry
        # the residual lanes through; both biases already folded in above).
        acc = jnp.dot(u, m_ref[i], preferred_element_type=jnp.float32)
        h = acc if i == n_blocks - 1 else acc.astype(compute_dtype)
        # Default nonlinearity='gelu' => ResidualMLP appends no inter-block
        # activation, so nothing more happens here.

    out_ref[...] = h[:, :out_w].astype(out_ref.dtype)


# --------------------------------------------------------------------------
# Parameter construction / packing
# --------------------------------------------------------------------------
def make_params(key, dim_list, *, zero_bias=True):
    """Parameters mirroring ResidualBlock.init_weights: orthogonal(gain=sqrt(2))
    weights, zero biases.  Weights are stored pre-transposed as (in, out) so the
    kernel computes x @ W + b.  zero_bias=False produces nonzero biases to
    exercise the bias-folding path (trained-weight scenario)."""
    gain = math.sqrt(2.0)  # nn.init.calculate_gain('relu')
    ortho = jax.nn.initializers.orthogonal(scale=gain)
    params = []
    for din, dout in zip(dim_list[:-1], dim_list[1:]):
        key, k1, k2, kr, kb = jax.random.split(key, 5)
        w1 = ortho(k1, (din, dout), jnp.float32)   # net[0]: Linear(din, dout)
        w2 = ortho(k2, (dout, dout), jnp.float32)  # net[2]: Linear(dout, dout)
        wr = ortho(kr, (din, dout), jnp.float32)   # residual: Linear(din, dout)
        if zero_bias:
            b1 = b2 = br = jnp.zeros((1, dout), jnp.float32)
        else:
            b1, b2, br = 0.1 * jax.random.normal(kb, (3, 1, dout), jnp.float32)
        params += [w1, b1, w2, b2, wr, br]
    return params


def pack_params(params, dim_list, *, param_dtype=jnp.float32):
    """Pack per-block params into three slabs (do this ONCE, reuse every call).

    Compact mode (all dout <= P//2, true for cartpole): W = P, r_off = P//2.
    Wide fallback otherwise: W = 2P, r_off = P.  In both cases the residual
    identity and b2 are folded so the kernel is just two matmuls per block.
    """
    n_blocks = len(dim_list) - 1
    p = _round_up(max(dim_list), LANE)
    max_dout = max(dim_list[1:])
    r_off = p // 2 if 2 * max_dout <= p else p
    w = 2 * r_off if r_off == p else p        # -> P (compact) or 2P (wide)

    wcat = jnp.zeros((n_blocks, p, w), param_dtype)
    m = jnp.zeros((n_blocks, w, p), param_dtype)
    bias = jnp.zeros((n_blocks, 1, w), jnp.float32)   # bias kept in f32
    for i, (din, dout) in enumerate(zip(dim_list[:-1], dim_list[1:])):
        w1, b1, w2, b2, wr, br = params[6 * i:6 * i + 6]
        wcat = wcat.at[i, :din, :dout].set(w1.astype(param_dtype))
        wcat = wcat.at[i, :din, r_off:r_off + dout].set(wr.astype(param_dtype))
        m = m.at[i, :dout, :dout].set(w2.astype(param_dtype))
        m = m.at[i, r_off:r_off + dout, :dout].set(jnp.eye(dout, dtype=param_dtype))
        bias = bias.at[i, 0, :dout].set(b1[0])
        bias = bias.at[i, 0, r_off:r_off + dout].set(br[0] + b2[0])  # fold b2
    return {"wcat": wcat, "m": m, "bias": bias, "r_off": r_off,
            "dim_list": tuple(dim_list)}


# --------------------------------------------------------------------------
# Forward wrapper
# --------------------------------------------------------------------------
def residual_mlp_cartpole_forward(inp, packed, *, batch_tile=512,
                                  vmem_budget_bytes=24 << 20):
    """Matches ResidualMLP_Cartpole.forward(inp) -> (out, None)."""
    x = inp["robot"]
    wcat, m, bias = packed["wcat"], packed["m"], packed["bias"]
    r_off = packed["r_off"]
    dim_list = packed["dim_list"]
    n_blocks, p, w = wcat.shape
    in_dim, out_dim = dim_list[0], dim_list[-1]
    batch = x.shape[0]
    compute_dtype = wcat.dtype
    itemsize = jnp.dtype(compute_dtype).itemsize

    # Large batch -> HBM-bound on the output: write only out_dim lanes.
    # Small batch -> keep lane-dense, unmasked stores.
    batch8 = _round_up(batch, SUBLANE)
    narrow_out = batch8 >= 1024
    out_w = out_dim if narrow_out else p

    # ---- VMEM-budget-derived batch tile -----------------------------------
    # double-buffered weight slabs + double-buffered in/out tiles + ~6 f32
    # compiler temps of (tb, P) inside the unrolled block loop.
    slab_bytes = 2 * (wcat.size * itemsize + m.size * itemsize + bias.size * 4)
    per_row = (2 * (in_dim * x.dtype.itemsize + out_w * 4) + 6 * p * 4)
    avail = max(vmem_budget_bytes - slab_bytes, SUBLANE * per_row)
    tb = min(batch_tile, batch8, (avail // per_row) // SUBLANE * SUBLANE)
    tb = max(tb, SUBLANE)
    # v7x megacore: ensure >= 2 grid steps for non-trivial batches so
    # dimension_semantics=("parallel",) can shard rows across both TCs.
    if batch8 >= 2 * SUBLANE:
        tb = min(tb, _round_up((batch8 + 1) // 2, SUBLANE))
    batch_pad = _round_up(batch8, tb)

    # Row-pad only; NO lane padding here (done in-kernel, 32x fewer HBM bytes).
    x_in = x if batch_pad == batch else jnp.pad(x, ((0, batch_pad - batch), (0, 0)))

    cost = pl.CostEstimate(
        flops=4 * batch_pad * n_blocks * p * w,   # 2 matmuls/block, 2 flop/MAC
        transcendentals=0,
        bytes_accessed=(x_in.size * x_in.dtype.itemsize
                        + batch_pad * out_w * 4
                        + (wcat.size + m.size) * itemsize + bias.size * 4))

    kernel = functools.partial(residual_mlp_kernel, n_blocks=n_blocks,
                               r_off=r_off, out_w=out_w,
                               compute_dtype=compute_dtype)
    out_pad = pl.pallas_call(
        kernel,
        out_shape=jax.ShapeDtypeStruct((batch_pad, out_w), jnp.float32),
        grid=(batch_pad // tb,),
        in_specs=[
            pl.BlockSpec((tb, in_dim), lambda i: (i, 0)),
            pl.BlockSpec((n_blocks, p, w), lambda i: (0, 0, 0)),
            pl.BlockSpec((n_blocks, w, p), lambda i: (0, 0, 0)),
            pl.BlockSpec((n_blocks, 1, w), lambda i: (0, 0, 0)),
        ],
        out_specs=pl.BlockSpec((tb, out_w), lambda i: (i, 0)),
        scratch_shapes=[pltpu.VMEM((tb, p), compute_dtype)],
        compiler_params=pltpu.CompilerParams(
            dimension_semantics=("parallel",),
            vmem_limit_bytes=32 * 1024 * 1024),
        cost_estimate=cost,
    )(x_in, wcat, m, bias)

    # Slice back to the real (batch, out_dim) in plain XLA (cheap).
    return out_pad[:batch, :out_dim], None


# --------------------------------------------------------------------------
# Pure-JAX reference (for correctness check)
# --------------------------------------------------------------------------
def residual_mlp_ref(x, params, dim_list):
    h = x.astype(jnp.float32)
    for i in range(len(dim_list) - 1):
        w1, b1, w2, b2, wr, br = params[6 * i:6 * i + 6]
        h = jnp.maximum(h @ w1 + b1, 0.0) @ w2 + b2 + h @ wr + br
    return h


if __name__ == "__main__":
    # Cartpole-sized problem: obs dim 4, two hidden residual blocks of 32,
    # output dim 2; batch of 8 environments.
    dim_list = [4, 32, 32, 2]
    batch = 8

    key = jax.random.PRNGKey(0)
    kx, kp, kb = jax.random.split(key, 3)
    robot = jax.random.normal(kx, (batch, dim_list[0]), dtype=jnp.float32)
    inp = {"robot": robot}

    # 1) Module-faithful init (orthogonal gain sqrt(2), zero biases), f32 params.
    params = make_params(kp, dim_list)
    packed = pack_params(params, dim_list)              # pack once, reuse
    out, aux = residual_mlp_cartpole_forward(inp, packed)
    out = jax.block_until_ready(out)
    assert out.shape == (batch, dim_list[-1])
    assert aux is None
    ref = residual_mlp_ref(robot, params, dim_list)
    assert jnp.allclose(out, ref, atol=1e-5, rtol=1e-5), "f32 mismatch vs reference"

    # 2) Nonzero biases (trained-weight scenario) to exercise the b2/br folding.
    params_b = make_params(kb, dim_list, zero_bias=False)
    packed_b = pack_params(params_b, dim_list)
    out_b, _ = residual_mlp_cartpole_forward(inp, packed_b)
    ref_b = residual_mlp_ref(robot, params_b, dim_list)
    assert jnp.allclose(jax.block_until_ready(out_b), ref_b, atol=1e-5, rtol=1e-5), \
        "nonzero-bias mismatch vs reference"

    # 3) bf16 slabs (v6e/v7x MXU path) at a larger batch: exercises the
    #    multi-tile parallel grid, row padding and the narrow-output path.
    big_batch = 1050
    robot_big = jax.random.normal(kx, (big_batch, dim_list[0]), dtype=jnp.float32)
    packed_bf16 = pack_params(params_b, dim_list, param_dtype=jnp.bfloat16)
    out_big, _ = residual_mlp_cartpole_forward({"robot": robot_big}, packed_bf16)
    out_big = jax.block_until_ready(out_big)
    ref_big = residual_mlp_ref(robot_big, params_b, dim_list)
    scale = jnp.maximum(jnp.max(jnp.abs(ref_big)), 1.0)
    max_err = jnp.max(jnp.abs(out_big - ref_big))
    assert max_err < 5e-2 * scale, f"bf16 path error too large: {max_err} (scale {scale})"

    print("KERNEL_OK")
</pallas_src>

<mosaic_0001>
module attributes {stable_mosaic.version = 11 : i64} {
  func.func @residual_mlp_kernel(%arg0: i32, %arg1: memref<8x4xf32, #tpu.memory_space<vmem>>, %arg2: memref<3x128x128xf32, #tpu.memory_space<vmem>>, %arg3: memref<3x128x128xf32, #tpu.memory_space<vmem>>, %arg4: memref<3x1x128xf32, #tpu.memory_space<vmem>>, %arg5: memref<8x128xf32, #tpu.memory_space<vmem>>, %arg6: memref<8x128xf32, #tpu.memory_space<vmem>>) attributes {dimension_semantics = [#tpu.dimension_semantics<parallel>], iteration_bounds = array<i64: 1>, scalar_prefetch = 0 : i64, scratch_operands = 1 : i64, tpu.core_type = #tpu.core_type<tc>, window_params = [{transform_indices = @transform_0, window_bounds = array<i64: 8, 4>}, {pipeline_mode = #tpu.pipeline_mode<synchronous>, transform_indices = @transform_1, window_bounds = array<i64: 3, 128, 128>}, {pipeline_mode = #tpu.pipeline_mode<synchronous>, transform_indices = @transform_2, window_bounds = array<i64: 3, 128, 128>}, {pipeline_mode = #tpu.pipeline_mode<synchronous>, transform_indices = @transform_3, window_bounds = array<i64: 3, 1, 128>}, {transform_indices = @transform_4, window_bounds = array<i64: 8, 128>}]} {
    %cst = arith.constant 0.000000e+00 : f32
    %0 = vector.broadcast %cst : f32 to vector<8x128xf32>
    %c0 = arith.constant 0 : index
    %c0_0 = arith.constant 0 : index
    %1 = vector.load %arg6[%c0, %c0_0] : memref<8x128xf32, #tpu.memory_space<vmem>>, vector<8x128xf32>
    tpu.vector_store %arg6[%c0, %c0_0], %0 {strides = array<i32>} : memref<8x128xf32, #tpu.memory_space<vmem>>, vector<8x128xf32>,
    %c0_1 = arith.constant 0 : index
    %c0_2 = arith.constant 0 : index
    %2 = vector.load %arg1[%c0_1, %c0_2] : memref<8x4xf32, #tpu.memory_space<vmem>>, vector<8x4xf32>
    %c0_3 = arith.constant 0 : index
    %c0_4 = arith.constant 0 : index
    %3 = vector.load %arg6[%c0_3, %c0_4] : memref<8x128xf32, #tpu.memory_space<vmem>>, vector<8x4xf32>
    tpu.vector_store %arg6[%c0_3, %c0_4], %2 {strides = array<i32>} : memref<8x128xf32, #tpu.memory_space<vmem>>, vector<8x4xf32>,
    %c0_5 = arith.constant 0 : index
    %c0_6 = arith.constant 0 : index
    %4 = vector.load %arg6[%c0_5, %c0_6] : memref<8x128xf32, #tpu.memory_space<vmem>>, vector<8x128xf32>
    %5 = tpu.iota {dimensions = array<i32: 1>} : vector<8x128xi32>
    %c64_i32 = arith.constant 64 : i32
    %6 = vector.broadcast %c64_i32 : i32 to vector<8x128xi32>
    %7 = arith.cmpi slt, %5, %6 : vector<8x128xi32>
    %c0_7 = arith.constant 0 : index
    %c0_8 = arith.constant 0 : index
    %c0_9 = arith.constant 0 : index
    %8 = vector.load %arg2[%c0_7, %c0_8, %c0_9] : memref<3x128x128xf32, #tpu.memory_space<vmem>>, vector<1x128x128xf32>
    %9 = vector.shape_cast %8 : vector<1x128x128xf32> to vector<128x128xf32>
    %cst_10 = arith.constant dense<0.000000e+00> : vector<8x128xf32>
    %10 = tpu.matmul %4, %9, %cst_10 {dimension_numbers = #tpu.dot_dimension_numbers<[1], [0], [0], [1], [0, 0, 1, 1], [], []>} : vector<8x128xf32>, vector<128x128xf32>, vector<8x128xf32> -> vector<8x128xf32>
    %c0_11 = arith.constant 0 : index
    %c0_12 = arith.constant 0 : index
    %c0_13 = arith.constant 0 : index
    %11 = vector.load %arg4[%c0_11, %c0_12, %c0_13] : memref<3x1x128xf32, #tpu.memory_space<vmem>>, vector<1x1x128xf32>
    %12 = vector.shape_cast %11 : vector<1x1x128xf32> to vector<1x128xf32>
    %13 = vector.broadcast %12 : vector<1x128xf32> to vector<8x128xf32>
    %14 = arith.addf %10, %13 : vector<8x128xf32>
    %cst_14 = arith.constant 0.000000e+00 : f32
    %15 = vector.broadcast %cst_14 : f32 to vector<8x128xf32>
    %16 = arith.maximumf %14, %15 : vector<8x128xf32>
    %17 = arith.select %7, %16, %14 : vector<8x128xi1>, vector<8x128xf32>
    %c0_15 = arith.constant 0 : index
    %c0_16 = arith.constant 0 : index
    %c0_17 = arith.constant 0 : index
    %18 = vector.load %arg3[%c0_15, %c0_16, %c0_17] : memref<3x128x128xf32, #tpu.memory_space<vmem>>, vector<1x128x128xf32>
    %19 = vector.shape_cast %18 : vector<1x128x128xf32> to vector<128x128xf32>
    %cst_18 = arith.constant dense<0.000000e+00> : vector<8x128xf32>
    %20 = tpu.matmul %17, %19, %cst_18 {dimension_numbers = #tpu.dot_dimension_numbers<[1], [0], [0], [1], [0, 0, 1, 1], [], []>} : vector<8x128xf32>, vector<128x128xf32>, vector<8x128xf32> -> vector<8x128xf32>
    %c1 = arith.constant 1 : index
    %c0_19 = arith.constant 0 : index
    %c0_20 = arith.constant 0 : index
    %21 = vector.load %arg2[%c1, %c0_19, %c0_20] : memref<3x128x128xf32, #tpu.memory_space<vmem>>, vector<1x128x128xf32>
    %22 = vector.shape_cast %21 : vector<1x128x128xf32> to vector<128x128xf32>
    %cst_21 = arith.constant dense<0.000000e+00> : vector<8x128xf32>
    %23 = tpu.matmul %20, %22, %cst_21 {dimension_numbers = #tpu.dot_dimension_numbers<[1], [0], [0], [1], [0, 0, 1, 1], [], []>} : vector<8x128xf32>, vector<128x128xf32>, vector<8x128xf32> -> vector<8x128xf32>
    %c1_22 = arith.constant 1 : index
    %c0_23 = arith.constant 0 : index
    %c0_24 = arith.constant 0 : index
    %24 = vector.load %arg4[%c1_22, %c0_23, %c0_24] : memref<3x1x128xf32, #tpu.memory_space<vmem>>, vector<1x1x128xf32>
    %25 = vector.shape_cast %24 : vector<1x1x128xf32> to vector<1x128xf32>
    %26 = vector.broadcast %25 : vector<1x128xf32> to vector<8x128xf32>
    %27 = arith.addf %23, %26 : vector<8x128xf32>
    %cst_25 = arith.constant 0.000000e+00 : f32
    %28 = vector.broadcast %cst_25 : f32 to vector<8x128xf32>
    %29 = arith.maximumf %27, %28 : vector<8x128xf32>
    %30 = arith.select %7, %29, %27 : vector<8x128xi1>, vector<8x128xf32>
    %c1_26 = arith.constant 1 : index
    %c0_27 = arith.constant 0 : index
    %c0_28 = arith.constant 0 : index
    %31 = vector.load %arg3[%c1_26, %c0_27, %c0_28] : memref<3x128x128xf32, #tpu.memory_space<vmem>>, vector<1x128x128xf32>
    %32 = vector.shape_cast %31 : vector<1x128x128xf32> to vector<128x128xf32>
    %cst_29 = arith.constant dense<0.000000e+00> : vector<8x128xf32>
    %33 = tpu.matmul %30, %32, %cst_29 {dimension_numbers = #tpu.dot_dimension_numbers<[1], [0], [0], [1], [0, 0, 1, 1], [], []>} : vector<8x128xf32>, vector<128x128xf32>, vector<8x128xf32> -> vector<8x128xf32>
    %c2 = arith.constant 2 : index
    %c0_30 = arith.constant 0 : index
    %c0_31 = arith.constant 0 : index
    %34 = vector.load %arg2[%c2, %c0_30, %c0_31] : memref<3x128x128xf32, #tpu.memory_space<vmem>>, vector<1x128x128xf32>
    %35 = vector.shape_cast %34 : vector<1x128x128xf32> to vector<128x128xf32>
    %cst_32 = arith.constant dense<0.000000e+00> : vector<8x128xf32>
    %36 = tpu.matmul %33, %35, %cst_32 {dimension_numbers = #tpu.dot_dimension_numbers<[1], [0], [0], [1], [0, 0, 1, 1], [], []>} : vector<8x128xf32>, vector<128x128xf32>, vector<8x128xf32> -> vector<8x128xf32>
    %c2_33 = arith.constant 2 : index
    %c0_34 = arith.constant 0 : index
    %c0_35 = arith.constant 0 : index
    %37 = vector.load %arg4[%c2_33, %c0_34, %c0_35] : memref<3x1x128xf32, #tpu.memory_space<vmem>>, vector<1x1x128xf32>
    %38 = vector.shape_cast %37 : vector<1x1x128xf32> to vector<1x128xf32>
    %39 = vector.broadcast %38 : vector<1x128xf32> to vector<8x128xf32>
    %40 = arith.addf %36, %39 : vector<8x128xf32>
    %cst_36 = arith.constant 0.000000e+00 : f32
    %41 = vector.broadcast %cst_36 : f32 to vector<8x128xf32>
    %42 = arith.maximumf %40, %41 : vector<8x128xf32>
    %43 = arith.select %7, %42, %40 : vector<8x128xi1>, vector<8x128xf32>
    %c2_37 = arith.constant 2 : index
    %c0_38 = arith.constant 0 : index
    %c0_39 = arith.constant 0 : index
    %44 = vector.load %arg3[%c2_37, %c0_38, %c0_39] : memref<3x128x128xf32, #tpu.memory_space<vmem>>, vector<1x128x128xf32>
    %45 = vector.shape_cast %44 : vector<1x128x128xf32> to vector<128x128xf32>
    %cst_40 = arith.constant dense<0.000000e+00> : vector<8x128xf32>
    %46 = tpu.matmul %43, %45, %cst_40 {dimension_numbers = #tpu.dot_dimension_numbers<[1], [0], [0], [1], [0, 0, 1, 1], [], []>} : vector<8x128xf32>, vector<128x128xf32>, vector<8x128xf32> -> vector<8x128xf32>
    %c0_41 = arith.constant 0 : index
    %c0_42 = arith.constant 0 : index
    %47 = vector.load %arg5[%c0_41, %c0_42] : memref<8x128xf32, #tpu.memory_space<vmem>>, vector<8x128xf32>
    tpu.vector_store %arg5[%c0_41, %c0_42], %46 {strides = array<i32>} : memref<8x128xf32, #tpu.memory_space<vmem>>, vector<8x128xf32>,
    return
  }
  func.func @transform_0(%arg0: i32) -> (i32, i32) {
    %c0_i32 = arith.constant 0 : i32
    %c0_i32_0 = arith.constant 0 : i32
    return %arg0, %c0_i32 : i32, i32
  }
  func.func @transform_1(%arg0: i32) -> (i32, i32, i32) {
    %c0_i32 = arith.constant 0 : i32
    %c0_i32_0 = arith.constant 0 : i32
    %c0_i32_1 = arith.constant 0 : i32
    %c0_i32_2 = arith.constant 0 : i32
    return %c0_i32, %c0_i32_0, %c0_i32_1 : i32, i32, i32
  }
  func.func @transform_2(%arg0: i32) -> (i32, i32, i32) {
    %c0_i32 = arith.constant 0 : i32
    %c0_i32_0 = arith.constant 0 : i32
    %c0_i32_1 = arith.constant 0 : i32
    %c0_i32_2 = arith.constant 0 : i32
    return %c0_i32, %c0_i32_0, %c0_i32_1 : i32, i32, i32
  }
  func.func @transform_3(%arg0: i32) -> (i32, i32, i32) {
    %c0_i32 = arith.constant 0 : i32
    %c0_i32_0 = arith.constant 0 : i32
    %c0_i32_1 = arith.constant 0 : i32
    %c0_i32_2 = arith.constant 0 : i32
    return %c0_i32, %c0_i32_0, %c0_i32_1 : i32, i32, i32
  }
  func.func @transform_4(%arg0: i32) -> (i32, i32) {
    %c0_i32 = arith.constant 0 : i32
    %c0_i32_0 = arith.constant 0 : i32
    return %arg0, %c0_i32 : i32, i32
  }
}

</mosaic_0001>

<bundles_post_ra>
// kernel: tpu_custom_call.1
= control target key start
LH: loop header
LB: loop body
LE: loop exit
PB: predicated region body
PF: predicated region fallthrough
CT: control target
= control target key end

     0   :  { %9 = vsyncpa [#allocation4], 0  ;;  %s1312_s0 = inlined_call_operand.vmem [shape: f32[8,4], index: 0, kind: input, shape index: {}]   ;;  %s1313_s1 = inlined_call_operand.hbm [shape: f32[3,128,128], index: 1, kind: input, shape index: {}]   ;;  %s1314_s2 = inlined_call_operand.hbm [shape: f32[3,128,128], index: 2, kind: input, shape index: {}]   ;;  %s1315_s3 = inlined_call_operand.vmem [shape: f32[3,1,128], index: 3, kind: input, shape index: {}]   ;;  %s1316_s4 = inlined_call_operand.hbm [shape: f32[8,128], index: 4, kind: output, shape index: {}]  }
   0x1   :  { %10 = vsyncpa [#allocation7], 0 }
   0x2   :  { %11 = vsyncpa [#allocation5], 0  ;;  %s1161_s15 = smov [#allocation3]   ;;  %s1089_s19 = scalar_lea.hbm %s1313_s1, 6144 }
   0x3   :  { %s19_s16 = sshll.u32 %s1161_s15, 4  ;;  %p1090_p0 = scmp.ne.s32.totalorder %s1313_s1, %s1089_s19  ;;  %s20_s16 = int_to_ptr.vmem [resolvable:$true] %s19_s16 }
   0x4   :  { %p1093_p1 = scmp.lt.u32.totalorder %s1089_s19, %s1313_s1 }
   0x6   :  { %p1095_p2 = pnand %p1093_p1, %p1090_p0 }
   0x8   :  { %1098 = shalt.err (!%p1095_p2)
}
   0x9   :  { %s1099_s24 = scalar_lea.vmem %s20_s16, 6144  ;;  %p1104_p4 = scmp.lt.s32.totalorder %s20_s16, %s20_s16 }
   0xa   :  { %p1100_p3 = scmp.ne.s32.totalorder %s20_s16, %s1099_s24  ;;  %p1105_p5 = scmp.lt.s32.totalorder %s1099_s24, %s1099_s24 }
   0xc   :  { %p1106_p6 = por %p1105_p5, %p1104_p4 }
   0xe   :  { %p1107_p7 = pnand %p1106_p6, %p1100_p3 }
  0x10   :  { %1110 = shalt.err (!%p1107_p7)
}
  0x11   :  { %s1162_s25 = smov 128   ;;  %s1163_s26 = smov 8  }
  0x12   :  { %25 = dma.hbm_to_vmem [thread:$0]  %s1313_s1, 6144, %s20_s16, [#allocation4], %s1162_s25, %s1162_s25, %s1163_s26  }
  0x13   :  { %s1164_s29 = smov [#allocation6]   ;;  %s1111_s7 = scalar_lea.hbm %s1314_s2, 6144 }
  0x14   :  { %s31_s30 = sshll.u32 %s1164_s29, 4  ;;  %p1112_p8 = scmp.ne.s32.totalorder %s1314_s2, %s1111_s7  ;;  %s32_s30 = int_to_ptr.vmem [resolvable:$true] %s31_s30 }
  0x15   :  { %p1115_p9 = scmp.lt.u32.totalorder %s1111_s7, %s1314_s2 }
  0x17   :  { %p1117_p10 = pnand %p1115_p9, %p1112_p8 }
  0x19   :  { %1120 = shalt.err (!%p1117_p10)
}
  0x1a   :  { %s1121_s12 = scalar_lea.vmem %s32_s30, 6144  ;;  %p1126_p12 = scmp.lt.s32.totalorder %s32_s30, %s32_s30 }
  0x1b   :  { %p1122_p11 = scmp.ne.s32.totalorder %s32_s30, %s1121_s12  ;;  %p1127_p13 = scmp.lt.s32.totalorder %s1121_s12, %s1121_s12 }
  0x1d   :  { %p1128_p0 = por %p1127_p13, %p1126_p12 }
  0x1f   :  { %p1129_p1 = pnand %p1128_p0, %p1122_p11 }
  0x21   :  { %1132 = shalt.err (!%p1129_p1)
}
  0x22   :  { %37 = dma.hbm_to_vmem [thread:$0]  %s1314_s2, 6144, %s32_s30, [#allocation7], %s1162_s25, %s1162_s25, %s1163_s26  }
  0x23   :  { %1155 = dma.done.wait [#allocation4], 6144  }
  0x24   :  { %1156 = vsyncadd [#allocation4], 4294961152 }
  0x25   :  { %1157 = dma.done.wait [#allocation7], 6144  }
  0x26   :  { %1158 = vsyncadd [#allocation7], 4294961152  ;;  %v1165_v0 = vmov 0.0|0.0   ;;  %v1166_v1 = vmov 0.0   ;;  %vm1167_vm0 = vmmov 0   ;;  %v54_v2 = vld [vmem:[#allocation3] sm:$0xff] }
  0x27   :  { %937 = vmatprep.subr.bf16.mxu0 %v1165_v0  ;;  %46 = vst [vmem:[#allocation2] sm:$0xff] %v1166_v1  ;;  %759 = vmatprep.mubr.msk.f32.mxu0 %vm1167_vm0, %v1166_v1  ;;  %v55_v3 = vld [vmem:[#allocation3 + $0x8] sm:$0xff]  ;;  %v56_v4 = vld [vmem:[#allocation3 + $0x10] sm:$0xff]  ;;  %v57_v6 = vld [vmem:[#allocation3 + $0x18] sm:$0xff]  ;;  %vm48_vm1 = vcmask 31744   ;;  %s1168_s20 = smov [#allocation8]  }
  0x28   :  { %961 = vmatprep.subr.bf16.mxu1 %v1165_v0  ;;  %794 = vmatprep.mubr.msk.f32.mxu1 %vm1167_vm0, %v1166_v1  ;;  %v938_v5 = vpack.c.bf16 %v55_v3, %v54_v2  ;;  %v941_v7 = vpack.c.bf16 %v57_v6, %v56_v4  ;;  %v58_v8 = vld [vmem:[#allocation3 + $0x20] sm:$0xff]  ;;  %v59_v9 = vld [vmem:[#allocation3 + $0x28] sm:$0xff]  ;;  %v47_v10 = vld [vmem:[%s1312_s0] sm:$0xff]  ;;  %s610_s21 = sshll.u32 %s1168_s20, 4  ;;  %s611_s21 = int_to_ptr.vmem [resolvable:$true] %s610_s21 }
  0x29   :  { %v149_v11 = vld [vmem:[#allocation6] sm:$0xff]  ;;  %49 = vst.msk [vmem:[#allocation2] sm:$0xff] %vm48_vm1, %v47_v10  ;;  %v150_v12 = vld [vmem:[#allocation6 + $0x8] sm:$0xff]  ;;  %v151_v13 = vld [vmem:[#allocation6 + $0x10] sm:$0xff]  ;;  %v944_v15 = vpack.c.bf16 %v59_v9, %v58_v8  ;;  %s1133_s22 = scalar_lea.vmem %s611_s21, 128  ;;  %p1138_p3 = scmp.lt.s32.totalorder %s611_s21, %s611_s21 }
  0x2a   :  { %939 = vmatpush3.bf16.msra.mxu0 %v938_v5  ;;  %v152_v14 = vld [vmem:[#allocation6 + $0x18] sm:$0xff]  ;;  %v962_v16 = vpack.c.bf16 %v150_v12, %v149_v11  ;;  %v60_v17 = vld [vmem:[#allocation3 + $0x30] sm:$0xff]  ;;  %v153_v20 = vld [vmem:[#allocation6 + $0x20] sm:$0xff]  ;;  %p1134_p2 = scmp.ne.s32.totalorder %s611_s21, %s1133_s22  ;;  %p1139_p4 = scmp.lt.s32.totalorder %s1133_s22, %s1133_s22 }
  0x2b   :  { %940 = vmatprep.subr.bf16.mxu0 %v1165_v0  ;;  %v61_v18 = vld [vmem:[#allocation3 + $0x38] sm:$0xff]  ;;  %v965_v19 = vpack.c.bf16 %v152_v14, %v151_v13  ;;  %v154_v21 = vld [vmem:[#allocation6 + $0x28] sm:$0xff]  ;;  %v62_v23 = vld [vmem:[#allocation3 + $0x40] sm:$0xff]  ;;  %v51_v14 = vlaneseq }
  0x2c   :  { %963 = vmatpush3.bf16.msra.mxu1 %v962_v16  ;;  %v947_v22 = vpack.c.bf16 %v61_v18, %v60_v17  ;;  %v63_v24 = vld [vmem:[#allocation3 + $0x48] sm:$0xff]  ;;  %v968_v25 = vpack.c.bf16 %v154_v21, %v153_v20  ;;  %v155_v26 = vld [vmem:[#allocation6 + $0x30] sm:$0xff]  ;;  %v156_v27 = vld [vmem:[#allocation6 + $0x38] sm:$0xff]  ;;  %p1140_p5 = por %p1139_p4, %p1138_p3 }
  0x2d   :  { %964 = vmatprep.subr.bf16.mxu1 %v1165_v0  ;;  %v950_v28 = vpack.c.bf16 %v63_v24, %v62_v23  ;;  %v64_v29 = vld [vmem:[#allocation3 + $0x50] sm:$0xff]  ;;  %v65_v30 = vld [vmem:[#allocation3 + $0x58] sm:$0xff]  ;;  %v971_v31 = vpack.c.bf16 %v156_v27, %v155_v26  ;;  %v157_v32 = vld [vmem:[#allocation6 + $0x40] sm:$0xff]  ;;  %v1257_v16 = vand.u32 127, %v51_v14 }
  0x2e   :  { %942 = vmatpush3.bf16.msra.mxu0 %v941_v7  ;;  %v158_v33 = vld [vmem:[#allocation6 + $0x48] sm:$0xff]  ;;  %v953_v34 = vpack.c.bf16 %v65_v30, %v64_v29  ;;  %v66_v35 = vld [vmem:[#allocation3 + $0x60] sm:$0xff]  ;;  %v159_v38 = vld [vmem:[#allocation6 + $0x50] sm:$0xff]  ;;  %p1141_p6 = pnand %p1140_p5, %p1134_p2 }
  0x2f   :  { %943 = vmatprep.subr.bf16.mxu0 %v1165_v0  ;;  %v67_v36 = vld [vmem:[#allocation3 + $0x68] sm:$0xff]  ;;  %v974_v37 = vpack.c.bf16 %v158_v33, %v157_v32  ;;  %v160_v39 = vld [vmem:[#allocation6 + $0x58] sm:$0xff]  ;;  %v68_v41 = vld [vmem:[#allocation3 + $0x70] sm:$0xff]  ;;  %vm53_vm2 = vcmp.lt.s32.totalorder %v1257_v16, 64 }
  0x30   :  { %966 = vmatpush3.bf16.msra.mxu1 %v965_v19  ;;  %v956_v40 = vpack.c.bf16 %v67_v36, %v66_v35  ;;  %v69_v42 = vld [vmem:[#allocation3 + $0x78] sm:$0xff]  ;;  %v977_v43 = vpack.c.bf16 %v160_v39, %v159_v38  ;;  %v161_v44 = vld [vmem:[#allocation6 + $0x60] sm:$0xff]  ;;  %v162_v45 = vld [vmem:[#allocation6 + $0x68] sm:$0xff] }
  0x31   :  { %967 = vmatprep.subr.bf16.mxu1 %v1165_v0  ;;  %v959_v46 = vpack.c.bf16 %v69_v42, %v68_v41  ;;  %v980_v47 = vpack.c.bf16 %v162_v45, %v161_v44  ;;  %v50_v48 = vld [vmem:[#allocation2] sm:$0xff]  ;;  %v163_v49 = vld [vmem:[#allocation6 + $0x70] sm:$0xff]  ;;  %v236_v52 = vld [vmem:[#allocation3 + $0x80] sm:$0xff] }
  0x32   :  { %945 = vmatpush3.bf16.msra.mxu0 %v944_v15  ;;  %v164_v50 = vld [vmem:[#allocation6 + $0x78] sm:$0xff]  ;;  %v237_v53 = vld [vmem:[#allocation3 + $0x88] sm:$0xff]  ;;  %v238_v54 = vld [vmem:[#allocation3 + $0x90] sm:$0xff] }
  0x33   :  { %946 = vmatprep.subr.bf16.mxu0 %v1165_v0  ;;  %v983_v51 = vpack.c.bf16 %v164_v50, %v163_v49  ;;  %v986_v55 = vpack.c.bf16 %v237_v53, %v236_v52  ;;  %v239_v56 = vld [vmem:[#allocation3 + $0x98] sm:$0xff]  ;;  %v240_v58 = vld [vmem:[#allocation3 + $0xa0] sm:$0xff]  ;;  %v241_v59 = vld [vmem:[#allocation3 + $0xa8] sm:$0xff] }
  0x34   :  { %969 = vmatpush3.bf16.msra.mxu1 %v968_v25  ;;  %v989_v57 = vpack.c.bf16 %v239_v56, %v238_v54  ;;  %v992_v60 = vpack.c.bf16 %v241_v59, %v240_v58  ;;  %v242_v61 = vld [vmem:[#allocation3 + $0xb0] sm:$0xff]  ;;  %v243_v62 = vld [vmem:[#allocation3 + $0xb8] sm:$0xff]  ;;  %v244_v2 = vld [vmem:[#allocation3 + $0xc0] sm:$0xff] }
  0x35   :  { %970 = vmatprep.subr.bf16.mxu1 %v1165_v0  ;;  %v995_v63 = vpack.c.bf16 %v243_v62, %v242_v61  ;;  %v245_v3 = vld [vmem:[#allocation3 + $0xc8] sm:$0xff]  ;;  %v246_v5 = vld [vmem:[#allocation3 + $0xd0] sm:$0xff]  ;;  %v247_v6 = vld [vmem:[#allocation3 + $0xd8] sm:$0xff] }
  0x36   :  { %948 = vmatpush3.bf16.msra.mxu0 %v947_v22  ;;  %v998_v4 = vpack.c.bf16 %v245_v3, %v244_v2  ;;  %v1001_v7 = vpack.c.bf16 %v247_v6, %v246_v5  ;;  %v248_v8 = vld [vmem:[#allocation3 + $0xe0] sm:$0xff]  ;;  %v249_v9 = vld [vmem:[#allocation3 + $0xe8] sm:$0xff]  ;;  %v250_v11 = vld [vmem:[#allocation3 + $0xf0] sm:$0xff] }
  0x37   :  { %949 = vmatprep.subr.bf16.mxu0 %v1165_v0  ;;  %v1004_v10 = vpack.c.bf16 %v249_v9, %v248_v8  ;;  %v251_v12 = vld [vmem:[#allocation3 + $0xf8] sm:$0xff]  ;;  %v620_v15 = vld [vmem:[%s1315_s3] ss:$0 sm:$0xff]  ;;  %v333_v22 = vld [vmem:[#allocation6 + $0x80] sm:$0xff] }
  0x38   :  { %972 = vmatpush3.bf16.msra.mxu1 %v971_v31  ;;  %v1007_v13 = vpack.c.bf16 %v251_v12, %v250_v11  ;;  %v334_v23 = vld [vmem:[#allocation6 + $0x88] sm:$0xff]  ;;  %v335_v24 = vld [vmem:[#allocation6 + $0x90] sm:$0xff]  ;;  %v336_v26 = vld [vmem:[#allocation6 + $0x98] sm:$0xff] }
  0x39   :  { %973 = vmatprep.subr.bf16.mxu1 %v1165_v0  ;;  %v1010_v25 = vpack.c.bf16 %v334_v23, %v333_v22  ;;  %v1013_v27 = vpack.c.bf16 %v336_v26, %v335_v24  ;;  %v338_v29 = vld [vmem:[#allocation6 + $0xa8] sm:$0xff]  ;;  %v339_v31 = vld [vmem:[#allocation6 + $0xb0] sm:$0xff]  ;;  %v340_v32 = vld [vmem:[#allocation6 + $0xb8] sm:$0xff] }
  0x3a   :  { %951 = vmatpush3.bf16.msra.mxu0 %v950_v28  ;;  %v337_v28 = vld [vmem:[#allocation6 + $0xa0] sm:$0xff]  ;;  %v1019_v33 = vpack.c.bf16 %v340_v32, %v339_v31  ;;  %v342_v35 = vld [vmem:[#allocation6 + $0xc8] sm:$0xff]  ;;  %v344_v38 = vld [vmem:[#allocation6 + $0xd8] sm:$0xff] }
  0x3b   :  { %952 = vmatprep.subr.bf16.mxu0 %v1165_v0  ;;  %v1016_v30 = vpack.c.bf16 %v338_v29, %v337_v28  ;;  %v346_v41 = vld [vmem:[#allocation6 + $0xe8] sm:$0xff]  ;;  %v347_v45 = vld [vmem:[#allocation6 + $0xf0] sm:$0xff]  ;;  %v423_v52 = vld [vmem:[#allocation3 + $0x118] sm:$0xff] }
  0x3c   :  { %975 = vmatpush3.bf16.msra.mxu1 %v974_v37  ;;  %v343_v37 = vld [vmem:[#allocation6 + $0xd0] sm:$0xff]  ;;  %v421_v49 = vld [vmem:[#allocation3 + $0x108] sm:$0xff]  ;;  %v424_v54 = vld [vmem:[#allocation3 + $0x120] sm:$0xff] }
  0x3d   :  { %976 = vmatprep.subr.bf16.mxu1 %v1165_v0  ;;  %v1025_v39 = vpack.c.bf16 %v344_v38, %v343_v37  ;;  %v422_v50 = vld [vmem:[#allocation3 + $0x110] sm:$0xff]  ;;  %v427_v58 = vld [vmem:[#allocation3 + $0x138] sm:$0xff]  ;;  %v429_v61 = vld [vmem:[#allocation3 + $0x148] sm:$0xff] }
  0x3e   :  { %954 = vmatpush3.bf16.msra.mxu0 %v953_v34  ;;  %v341_v34 = vld [vmem:[#allocation6 + $0xc0] sm:$0xff]  ;;  %v1037_v53 = vpack.c.bf16 %v423_v52, %v422_v50  ;;  %v431_v2 = vld [vmem:[#allocation3 + $0x158] sm:$0xff]  ;;  %v433_v5 = vld [vmem:[#allocation3 + $0x168] sm:$0xff] }
  0x3f   :  { %955 = vmatprep.subr.bf16.mxu0 %v1165_v0  ;;  %v1022_v36 = vpack.c.bf16 %v342_v35, %v341_v34  ;;  %v435_v8 = vld [vmem:[#allocation3 + $0x178] sm:$0xff]  ;;  %v521_v23 = vld [vmem:[#allocation6 + $0x120] sm:$0xff]  ;;  %v522_v24 = vld [vmem:[#allocation6 + $0x128] sm:$0xff] }
  0x40   :  { %978 = vmatpush3.bf16.msra.mxu1 %v977_v43  ;;  %v523_v26 = vld [vmem:[#allocation6 + $0x130] sm:$0xff]  ;;  %v526_v29 = vld [vmem:[#allocation6 + $0x148] sm:$0xff]  ;;  %v528_v32 = vld [vmem:[#allocation6 + $0x158] sm:$0xff] }
  0x41   :  { %979 = vmatprep.subr.bf16.mxu1 %v1165_v0  ;;  %v527_v31 = vld [vmem:[#allocation6 + $0x150] sm:$0xff]  ;;  %v529_v34 = vld [vmem:[#allocation6 + $0x160] sm:$0xff]  ;;  %v530_v35 = vld [vmem:[#allocation6 + $0x168] sm:$0xff] }
  0x42   :  { %957 = vmatpush3.bf16.msra.mxu0 %v956_v40  ;;  %v345_v40 = vld [vmem:[#allocation6 + $0xe0] sm:$0xff] }
  0x43   :  { %958 = vmatprep.subr.bf16.mxu0 %v1165_v0  ;;  %v1028_v42 = vpack.c.bf16 %v346_v41, %v345_v40  ;;  %v532_v40 = vld [vmem:[#allocation6 + $0x178] sm:$0xff] }
  0x44   :  { %981 = vmatpush3.bf16.msra.mxu1 %v980_v47 }
  0x45   :  { %982 = vmatprep.subr.bf16.mxu1 %v1165_v0 }
  0x46   :  { %960 = vmatpush3.bf16.msra.mxu0 %v959_v46  ;;  %v348_v46 = vld [vmem:[#allocation6 + $0xf8] sm:$0xff] }
  0x47   :  { %985 = vmatprep.subr.bf16.mxu0 %v1165_v0  ;;  %v1031_v47 = vpack.c.bf16 %v348_v46, %v347_v45 }
  0x48   :  { %984 = vmatpush3.bf16.msra.mxu1 %v983_v51 }
  0x49   :  { %760 = vmatmul.mubr.f32.vlgmr.msra.gmra.mrb[0].mxu0 %v50_v48  ;;  %1009 = vmatprep.subr.bf16.mxu1 %v1165_v0  ;;  %v420_v48 = vld [vmem:[#allocation3 + $0x100] sm:$0xff] }
  0x4a   :  { %829 = vmatprep.mubr.msk.f32.mxu0 %vm1167_vm0, %v1166_v1  ;;  %987 = vmatpush3.bf16.msra.mxu0 %v986_v55  ;;  %v1034_v51 = vpack.c.bf16 %v421_v49, %v420_v48  ;;  %v425_v55 = vld [vmem:[#allocation3 + $0x128] sm:$0xff] }
  0x4b   :  { %988 = vmatprep.subr.bf16.mxu0 %v1165_v0  ;;  %v1040_v56 = vpack.c.bf16 %v425_v55, %v424_v54 }
  0x4e   :  { %990 = vmatpush3.bf16.msra.mxu0 %v989_v57  ;;  %v426_v57 = vld [vmem:[#allocation3 + $0x130] sm:$0xff] }
  0x4f   :  { %991 = vmatprep.subr.bf16.mxu0 %v1165_v0  ;;  %v1043_v59 = vpack.c.bf16 %v427_v58, %v426_v57 }
  0x52   :  { %993 = vmatpush3.bf16.msra.mxu0 %v992_v60  ;;  %v428_v60 = vld [vmem:[#allocation3 + $0x140] sm:$0xff] }
  0x53   :  { %994 = vmatprep.subr.bf16.mxu0 %v1165_v0  ;;  %v1046_v62 = vpack.c.bf16 %v429_v61, %v428_v60 }
  0x56   :  { %996 = vmatpush3.bf16.msra.mxu0 %v995_v63  ;;  %v430_v63 = vld [vmem:[#allocation3 + $0x150] sm:$0xff] }
  0x57   :  { %997 = vmatprep.subr.bf16.mxu0 %v1165_v0  ;;  %v1049_v3 = vpack.c.bf16 %v431_v2, %v430_v63 }
  0x5a   :  { %999 = vmatpush3.bf16.msra.mxu0 %v998_v4  ;;  %v432_v4 = vld [vmem:[#allocation3 + $0x160] sm:$0xff] }
  0x5b   :  { %1000 = vmatprep.subr.bf16.mxu0 %v1165_v0  ;;  %v1052_v6 = vpack.c.bf16 %v433_v5, %v432_v4 }
  0x5e   :  { %1002 = vmatpush3.bf16.msra.mxu0 %v1001_v7  ;;  %v434_v7 = vld [vmem:[#allocation3 + $0x170] sm:$0xff] }
  0x5f   :  { %1003 = vmatprep.subr.bf16.mxu0 %v1165_v0  ;;  %v1055_v9 = vpack.c.bf16 %v435_v8, %v434_v7 }
  0x62   :  { %1005 = vmatpush3.bf16.msra.mxu0 %v1004_v10  ;;  %v622_v10 = vld [vmem:[%s1315_s3 + $0x1] ss:$0 sm:$0xff] }
  0x63   :  { %1006 = vmatprep.subr.bf16.mxu0 %v1165_v0 }
  0x66   :  { %1008 = vmatpush3.bf16.msra.mxu0 %v1007_v13 }
  0x67   :  { %1033 = vmatprep.subr.bf16.mxu0 %v1165_v0 }
 0x11c   :  { %v143_v17 = vpop.f32.mrb[0].mxu0 }
 0x11d   :  { %v144_v18 = vadd.f32 %v620_v15, %v143_v17  ;;  %v761_v19 = vpop.f32.mrb[1].mxu0  ;;  %v517_v17 = vld [vmem:[#allocation6 + $0x100] sm:$0xff] }
 0x11e   :  { %v519_v19 = vld [vmem:[#allocation6 + $0x110] sm:$0xff] }
 0x11f   :  { %v147_v20 = vmax.f32 %v144_v18, 0.0 }
 0x121   :  { %v148_v21 = vsel %vm53_vm2, %v147_v20, %v144_v18  ;;  %v518_v18 = vld [vmem:[#allocation6 + $0x108] sm:$0xff] }
 0x122   :  { %795 = vmatmul.mubr.f32.vlgmr.msra.gmra.mrb[0].mxu1 %v148_v21  ;;  %v1058_v20 = vpack.c.bf16 %v518_v18, %v517_v17  ;;  %v520_v21 = vld [vmem:[#allocation6 + $0x118] sm:$0xff] }
 0x123   :  { %864 = vmatprep.mubr.msk.f32.mxu1 %vm1167_vm0, %v1166_v1  ;;  %1011 = vmatpush3.bf16.msra.mxu1 %v1010_v25  ;;  %v1061_v22 = vpack.c.bf16 %v520_v21, %v519_v19  ;;  %v1064_v25 = vpack.c.bf16 %v522_v24, %v521_v23 }
 0x124   :  { %1012 = vmatprep.subr.bf16.mxu1 %v1165_v0 }
 0x127   :  { %1014 = vmatpush3.bf16.msra.mxu1 %v1013_v27  ;;  %v524_v27 = vld [vmem:[#allocation6 + $0x138] sm:$0xff] }
 0x128   :  { %1015 = vmatprep.subr.bf16.mxu1 %v1165_v0  ;;  %v1067_v28 = vpack.c.bf16 %v524_v27, %v523_v26 }
 0x12b   :  { %1017 = vmatpush3.bf16.msra.mxu1 %v1016_v30 }
 0x12c   :  { %1018 = vmatprep.subr.bf16.mxu1 %v1165_v0 }
 0x12f   :  { %1020 = vmatpush3.bf16.msra.mxu1 %v1019_v33  ;;  %v1073_v33 = vpack.c.bf16 %v528_v32, %v527_v31 }
 0x130   :  { %1021 = vmatprep.subr.bf16.mxu1 %v1165_v0 }
 0x133   :  { %1023 = vmatpush3.bf16.msra.mxu1 %v1022_v36  ;;  %v1076_v36 = vpack.c.bf16 %v530_v35, %v529_v34 }
 0x134   :  { %1024 = vmatprep.subr.bf16.mxu1 %v1165_v0 }
 0x137   :  { %1026 = vmatpush3.bf16.msra.mxu1 %v1025_v39  ;;  %v531_v39 = vld [vmem:[#allocation6 + $0x170] sm:$0xff] }
 0x138   :  { %1027 = vmatprep.subr.bf16.mxu1 %v1165_v0  ;;  %v1079_v41 = vpack.c.bf16 %v532_v40, %v531_v39 }
 0x13b   :  { %1029 = vmatpush3.bf16.msra.mxu1 %v1028_v42  ;;  %v624_v42 = vld [vmem:[%s1315_s3 + $0x2] ss:$0 sm:$0xff] }
 0x13c   :  { %1030 = vmatprep.subr.bf16.mxu1 %v1165_v0 }
 0x13f   :  { %1032 = vmatpush3.bf16.msra.mxu1 %v1031_v47 }
 0x140   :  { %1057 = vmatprep.subr.bf16.mxu1 %v1165_v0 }
 0x1f5   :  { %v231_v43 = vpop.f32.mrb[0].mxu1 }
 0x1f6   :  { %v796_v44 = vpop.f32.mrb[1].mxu1  ;;  %830 = vmatmul.mubr.f32.vlgmr.msra.gmra.mrb[2].mxu0 %v231_v43 }
 0x1f7   :  { %899 = vmatprep.mubr.msk.f32.mxu0 %vm1167_vm0, %v1166_v1  ;;  %1035 = vmatpush3.bf16.msra.mxu0 %v1034_v51 }
 0x1f8   :  { %1036 = vmatprep.subr.bf16.mxu0 %v1165_v0 }
 0x1fb   :  { %1038 = vmatpush3.bf16.msra.mxu0 %v1037_v53 }
 0x1fc   :  { %1039 = vmatprep.subr.bf16.mxu0 %v1165_v0 }
 0x1ff   :  { %1041 = vmatpush3.bf16.msra.mxu0 %v1040_v56 }
 0x200   :  { %1042 = vmatprep.subr.bf16.mxu0 %v1165_v0 }
 0x203   :  { %1044 = vmatpush3.bf16.msra.mxu0 %v1043_v59 }
 0x204   :  { %1045 = vmatprep.subr.bf16.mxu0 %v1165_v0 }
 0x207   :  { %1047 = vmatpush3.bf16.msra.mxu0 %v1046_v62 }
 0x208   :  { %1048 = vmatprep.subr.bf16.mxu0 %v1165_v0 }
 0x20b   :  { %1050 = vmatpush3.bf16.msra.mxu0 %v1049_v3 }
 0x20c   :  { %1051 = vmatprep.subr.bf16.mxu0 %v1165_v0 }
 0x20f   :  { %1053 = vmatpush3.bf16.msra.mxu0 %v1052_v6 }
 0x210   :  { %1054 = vmatprep.subr.bf16.mxu0 %v1165_v0 }
 0x213   :  { %1056 = vmatpush3.bf16.msra.mxu0 %v1055_v9 }
 0x2c9   :  { %v326_v11 = vpop.f32.mrb[2].mxu0 }
 0x2ca   :  { %v327_v12 = vadd.f32 %v622_v10, %v326_v11  ;;  %v831_v13 = vpop.f32.mrb[3].mxu0 }
 0x2cc   :  { %v330_v14 = vmax.f32 %v327_v12, 0.0 }
 0x2ce   :  { %v331_v15 = vsel %vm53_vm2, %v330_v14, %v327_v12 }
 0x2cf   :  { %865 = vmatmul.mubr.f32.vlgmr.msra.gmra.mrb[2].mxu1 %v331_v15 }
 0x2d0   :  { %934 = vmatprep.mubr.msk.f32.mxu1 %vm1167_vm0, %v1166_v1  ;;  %1059 = vmatpush3.bf16.msra.mxu1 %v1058_v20  ;;  %v525_v1 = vld [vmem:[#allocation6 + $0x140] sm:$0xff] }
 0x2d1   :  { %1060 = vmatprep.subr.bf16.mxu1 %v1165_v0  ;;  %v1070_v30 = vpack.c.bf16 %v526_v29, %v525_v1 }
 0x2d4   :  { %1062 = vmatpush3.bf16.msra.mxu1 %v1061_v22 }
 0x2d5   :  { %1063 = vmatprep.subr.bf16.mxu1 %v1165_v0 }
 0x2d8   :  { %1065 = vmatpush3.bf16.msra.mxu1 %v1064_v25 }
 0x2d9   :  { %1066 = vmatprep.subr.bf16.mxu1 %v1165_v0 }
 0x2dc   :  { %1068 = vmatpush3.bf16.msra.mxu1 %v1067_v28 }
 0x2dd   :  { %1069 = vmatprep.subr.bf16.mxu1 %v1165_v0 }
 0x2e0   :  { %1071 = vmatpush3.bf16.msra.mxu1 %v1070_v30 }
 0x2e1   :  { %1072 = vmatprep.subr.bf16.mxu1 %v1165_v0 }
 0x2e4   :  { %1074 = vmatpush3.bf16.msra.mxu1 %v1073_v33 }
 0x2e5   :  { %1075 = vmatprep.subr.bf16.mxu1 %v1165_v0 }
 0x2e8   :  { %1077 = vmatpush3.bf16.msra.mxu1 %v1076_v36 }
 0x2e9   :  { %1078 = vmatprep.subr.bf16.mxu1 %v1165_v0 }
 0x2ec   :  { %1080 = vmatpush3.bf16.msra.mxu1 %v1079_v41 }
 0x3a2   :  { %v415_v37 = vpop.f32.mrb[2].mxu1 }
 0x3a3   :  { %v866_v38 = vpop.f32.mrb[3].mxu1  ;;  %900 = vmatmul.mubr.f32.vlgmr.msra.gmra.mrb[4].mxu0 %v415_v37 }
 0x476   :  { %v510_v43 = vpop.f32.mrb[4].mxu0 }
 0x477   :  { %v511_v44 = vadd.f32 %v624_v42, %v510_v43  ;;  %v901_v45 = vpop.f32.mrb[5].mxu0 }
 0x479   :  { %v514_v46 = vmax.f32 %v511_v44, 0.0 }
 0x47b   :  { %v515_v47 = vsel %vm53_vm2, %v514_v46, %v511_v44 }
 0x47c   :  { %935 = vmatmul.mubr.f32.vlgmr.msra.gmra.mrb[4].mxu1 %v515_v47 }
 0x54f   :  { %v599_v0 = vpop.f32.mrb[4].mxu1 }
 0x550   :  { %603 = vst [vmem:[#allocation8] sm:$0xff] %v599_v0  ;;  %v936_v48 = vpop.f32.mrb[5].mxu1 }
 0x551   :  { %1144 = shalt.err (!%p1141_p6)
}
 0x552   :  { %s1145_s24 = scalar_lea.hbm %s1316_s4, 128 }
 0x553   :  { %p1146_p7 = scmp.ne.s32.totalorder %s1316_s4, %s1145_s24  ;;  %p1149_p8 = scmp.lt.u32.totalorder %s1145_s24, %s1316_s4 }
 0x555   :  { %p1151_p9 = pnand %p1149_p8, %p1146_p7 }
 0x557   :  { %1154 = shalt.err (!%p1151_p9)
}
 0x558   :  { %613 = dma.vmem_to_hbm [thread:$0]  %s611_s21, 128, %s1316_s4, [#allocation5]  }
 0x559   :  { %1159 = dma.done.wait [#allocation5], 128  }
 0x55a   :  { %1160 = vsyncadd [#allocation5], 4294967168 }
 0x55b   :  { %617 = vsyncpa [#allocation4], 1 }
 0x55c   :  { %618 = vsyncpa [#allocation7], 1 }
 0x55d   :  { %619 = vsyncpa [#allocation5], 1 }

</bundles_post_ra>
